<compile_context>
chip_gen: v7x
topology: tpu7x:2x2x1
jax: 0.10.0
libtpu: 0.0.40
codegen_flags: <defaults>
</compile_context>

<pallas_src>
import functools

import jax
import jax.numpy as jnp
from jax.experimental import pallas as pl
from jax.experimental.pallas import tpu as pltpu


def _mutual_attention_kernel(x_ref, y_ref,                 # (C, bt*HW)
                             wq_ref, wkv_ref, wo_ref,      # (C,C), (2C,C), (C,C)
                             bq_ref, bkv_ref, bo_ref,      # (C,1), (2C,1), (C,1) f32
                             temp_ref, mask_ref,           # (C,1), (C,C) f32
                             o_ref,                        # (C, bt*HW)
                             q_scr, kv_scr, out_scr,       # VMEM scratch
                             *, bt, hw, compute_dtype):
    c = wq_ref.shape[0]
    eps2 = 1e-24  # torch F.normalize eps=1e-12; clamp ||.||^2 at eps^2

    # ---- Batched 1x1 projections: ONE matmul per grid step over all bt items.
    q_scr[...] = (jnp.dot(wq_ref[...], x_ref[...],
                          preferred_element_type=jnp.float32) + bq_ref[...])
    kv_scr[...] = (jnp.dot(wkv_ref[...], y_ref[...],
                           preferred_element_type=jnp.float32) + bkv_ref[...])

    temp_rows = temp_ref[...]   # (C, 1)  per-row (= per-head) temperature
    mask_bias = mask_ref[...]   # (C, C)  0 on-head / -1e30 off-head

    # ---- Tiny per-item attention core ((C,C) logits). Slices of the VMEM
    # scratch refs are views; per-iteration intermediates are (C,HW)/(C,C).
    for i in range(bt):
        s0 = i * hw
        qi = q_scr[:, s0:s0 + hw]          # (C, HW) f32
        ki = kv_scr[:c, s0:s0 + hw]        # (C, HW) f32
        vi = kv_scr[c:, s0:s0 + hw]        # (C, HW) f32

        # Row-wise L2 normalization in f32 (rsqrt -> EUP slot).
        qn = qi * jax.lax.rsqrt(
            jnp.maximum(jnp.sum(qi * qi, axis=-1, keepdims=True), eps2))
        kn = ki * jax.lax.rsqrt(
            jnp.maximum(jnp.sum(ki * ki, axis=-1, keepdims=True), eps2))
        # Fold per-head temperature into q before the logit matmul.
        qn = qn * temp_rows

        # Block-diagonal logits for all heads in one (C,HW)x(HW,C) matmul.
        s = jnp.einsum('cn,dn->cd',
                       qn.astype(compute_dtype), kn.astype(compute_dtype),
                       preferred_element_type=jnp.float32) + mask_bias

        # Softmax over the masked last dim (f32).
        m = jnp.max(s, axis=-1, keepdims=True)
        e = jnp.exp(s - m)
        attn = e / jnp.sum(e, axis=-1, keepdims=True)

        # Value matmul (C,C)x(C,HW); write into the batched output slab.
        oi = jnp.dot(attn.astype(compute_dtype), vi.astype(compute_dtype),
                     preferred_element_type=jnp.float32)
        out_scr[:, s0:s0 + hw] = oi.astype(out_scr.dtype)

    # ---- Output 1x1 projection: ONE matmul for the whole batch block.
    o_ref[...] = (jnp.dot(wo_ref[...], out_scr[...],
                          preferred_element_type=jnp.float32)
                  + bo_ref[...]).astype(o_ref.dtype)


def _pick_batch_block(b, per_item_bytes, fixed_bytes, budget,
                      *, min_steps=2, max_bt=8):
    """Largest divisor of b that fits the VMEM budget, keeps >= min_steps grid
    steps (v7x: 2 TensorCores), and keeps the in-kernel unroll small."""
    best = 1
    for bt in range(1, min(b, max_bt) + 1):
        if b % bt:
            continue
        if b >= min_steps and (b // bt) < min_steps:
            continue
        if fixed_bytes + bt * per_item_bytes > budget:
            continue
        best = bt
    return best


def mutual_attention(x, y, params, num_heads, *,
                     compute_dtype=jnp.float32, batch_block=None):
    """x, y: (B, C, H, W). params: dict of weights/biases/temperature."""
    b, c, h, w = x.shape
    assert x.shape == y.shape
    assert c % num_heads == 0
    hw = h * w
    ch = c // num_heads

    cdt = jnp.dtype(compute_dtype)
    out_dt = x.dtype
    f32 = jnp.float32

    # ---- VMEM-aware batch-block pick (keep estimate <= ~48 MiB for v7x's
    # 64 MiB VMEM; shrink bt rather than clamping the limit).
    cdt_b = cdt.itemsize
    out_b = jnp.dtype(out_dt).itemsize
    slab_item = c * hw
    per_item_bytes = (2 * (2 * cdt_b + out_b) * slab_item      # dbl-buffered x,y,out blocks
                      + (3 * 4 + cdt_b) * slab_item)           # q/kv f32 + out cdt scratch
    fixed_bytes = (2 * 4 * c * c * cdt_b                       # weights (dbl-buffered)
                   + 2 * (4 * c + c * c + c) * 4               # biases + mask + temp
                   + 8 * c * hw * 4                            # per-iter vector temps
                   + (2 << 20))                                # headroom
    budget = 48 << 20
    bt = (_pick_batch_block(b, per_item_bytes, fixed_bytes, budget)
          if batch_block is None else batch_block)
    assert b % bt == 0, "batch_block must divide the batch size"
    est = fixed_bytes + bt * per_item_bytes
    vmem_bytes = int(min(64 << 20, max(32 << 20, est)))

    # ---- Lay slabs out as (C, B*HW) so one weight matmul covers a whole batch
    # block. The transpose/cast fuse under the caller's jit; the cast is a
    # no-op when dtypes already match (f32 default path).
    def to_slab(a):
        a = a.reshape(b, c, hw).transpose(1, 0, 2).reshape(c, b * hw)
        return a if a.dtype == cdt else a.astype(cdt)

    x_f = to_slab(x)
    y_f = to_slab(y)

    wq = params["wq"].astype(cdt)
    wkv = jnp.concatenate([params["wk"], params["wv"]], axis=0).astype(cdt)
    wo = params["wo"].astype(cdt)
    bq = params["bq"].reshape(c, 1).astype(f32)
    bkv = jnp.concatenate([params["bk"], params["bv"]],
                          axis=0).reshape(2 * c, 1).astype(f32)
    bo = params["bo"].reshape(c, 1).astype(f32)

    # Host-built per-row temperature and block-diagonal additive head mask
    # (hoisted out of the sequential grid loop).
    head_ids = jnp.arange(c, dtype=jnp.int32) // ch
    temp_rows = params["temperature"].reshape(-1).astype(f32)[head_ids].reshape(c, 1)
    mask_bias = jnp.where(head_ids[:, None] == head_ids[None, :],
                          jnp.float32(0.0), jnp.float32(-1e30))

    slab = pl.BlockSpec((c, bt * hw), lambda i: (0, i))
    w_cc = pl.BlockSpec((c, c), lambda i: (0, 0))
    w_2cc = pl.BlockSpec((2 * c, c), lambda i: (0, 0))
    b_c1 = pl.BlockSpec((c, 1), lambda i: (0, 0))
    b_2c1 = pl.BlockSpec((2 * c, 1), lambda i: (0, 0))

    kernel = functools.partial(_mutual_attention_kernel,
                               bt=bt, hw=hw, compute_dtype=cdt)

    out = pl.pallas_call(
        kernel,
        out_shape=jax.ShapeDtypeStruct((c, b * hw), out_dt),
        grid_spec=pltpu.PrefetchScalarGridSpec(
            num_scalar_prefetch=0,
            grid=(b // bt,),
            in_specs=[
                slab, slab,                   # x, y
                w_cc, w_2cc, w_cc,            # Wq, [Wk;Wv], Wo
                b_c1, b_2c1, b_c1,            # bq, [bk;bv], bo
                b_c1, w_cc,                   # temp_rows, mask_bias
            ],
            out_specs=slab,
            scratch_shapes=[
                pltpu.VMEM((c, bt * hw), f32),       # q
                pltpu.VMEM((2 * c, bt * hw), f32),   # [k; v]
                pltpu.VMEM((c, bt * hw), cdt),       # attention output slab
            ]),
        compiler_params=pltpu.CompilerParams(
            dimension_semantics=("parallel",),
            vmem_limit_bytes=vmem_bytes),
    )(x_f, y_f, wq, wkv, wo, bq, bkv, bo, temp_rows, mask_bias)

    return out.reshape(c, b, hw).transpose(1, 0, 2).reshape(b, c, h, w)


def mutual_attention_ref(x, y, params, num_heads):
    """Pure-JAX reference (mirrors the PyTorch forward)."""
    b, c, h, w = x.shape
    hw = h * w
    ch = c // num_heads

    def conv1x1(inp, wt, bias):
        return jnp.einsum('oc,bcn->bon', wt, inp.reshape(b, c, hw)) + bias[None]

    q = conv1x1(x, params["wq"], params["bq"]).reshape(b, num_heads, ch, hw)
    k = conv1x1(y, params["wk"], params["bk"]).reshape(b, num_heads, ch, hw)
    v = conv1x1(y, params["wv"], params["bv"]).reshape(b, num_heads, ch, hw)

    qn = q / jnp.maximum(jnp.linalg.norm(q, axis=-1, keepdims=True), 1e-12)
    kn = k / jnp.maximum(jnp.linalg.norm(k, axis=-1, keepdims=True), 1e-12)

    temp = params["temperature"].reshape(1, num_heads, 1, 1)
    attn = jnp.einsum('bhcn,bhdn->bhcd', qn, kn) * temp
    attn = jax.nn.softmax(attn, axis=-1)
    out = jnp.einsum('bhcd,bhdn->bhcn', attn, v).reshape(b, c, hw)
    out = jnp.einsum('oc,bcn->bon', params["wo"], out) + params["bo"][None]
    return out.reshape(b, c, h, w)


if __name__ == "__main__":
    B, C, H, W = 2, 32, 16, 16
    NUM_HEADS = 4

    key = jax.random.PRNGKey(0)
    keys = jax.random.split(key, 10)

    # Deterministic synthetic parameters (shapes from Mutual_Attention.__init__).
    params = {
        "wq": jax.random.normal(keys[0], (C, C), jnp.float32) * 0.1,
        "wk": jax.random.normal(keys[1], (C, C), jnp.float32) * 0.1,
        "wv": jax.random.normal(keys[2], (C, C), jnp.float32) * 0.1,
        "wo": jax.random.normal(keys[3], (C, C), jnp.float32) * 0.1,
        "bq": jax.random.normal(keys[4], (C, 1), jnp.float32) * 0.05,
        "bk": jax.random.normal(keys[5], (C, 1), jnp.float32) * 0.05,
        "bv": jax.random.normal(keys[6], (C, 1), jnp.float32) * 0.05,
        "bo": jax.random.normal(keys[7], (C, 1), jnp.float32) * 0.05,
        # nn.Parameter(torch.ones(num_heads, 1, 1)) -> flattened per-head scalars
        "temperature": jnp.ones((NUM_HEADS,), jnp.float32),
    }

    x = jax.random.normal(keys[8], (B, C, H, W), jnp.float32)
    y = jax.random.normal(keys[9], (B, C, H, W), jnp.float32)

    ref = mutual_attention_ref(x, y, params, NUM_HEADS)

    # f32 MXU operands: must match the reference at tight tolerance.
    out_f32 = jax.block_until_ready(mutual_attention(x, y, params, NUM_HEADS))
    assert out_f32.shape == (B, C, H, W)
    assert jnp.allclose(out_f32, ref, atol=1e-4, rtol=1e-4), "f32 mismatch vs reference"

    # bf16 MXU operands (MXU-native on v5e/v6e/v7x, halves slab DMA bytes);
    # normalize/softmax stay f32 in-kernel. Expected small drift -> loose tol.
    out_bf16 = jax.block_until_ready(
        mutual_attention(x, y, params, NUM_HEADS, compute_dtype=jnp.bfloat16))
    assert jnp.allclose(out_bf16, ref, atol=5e-2, rtol=5e-2), "bf16 mismatch vs reference"

    print("KERNEL_OK")
</pallas_src>

<mosaic_0001>
module attributes {stable_mosaic.version = 11 : i64} {
  func.func @_mutual_attention_kernel(%arg0: i32, %arg1: memref<32x256xf32, #tpu.memory_space<vmem>>, %arg2: memref<32x256xf32, #tpu.memory_space<vmem>>, %arg3: memref<32x32xf32, #tpu.memory_space<vmem>>, %arg4: memref<64x32xf32, #tpu.memory_space<vmem>>, %arg5: memref<32x32xf32, #tpu.memory_space<vmem>>, %arg6: memref<32x1xf32, #tpu.memory_space<vmem>>, %arg7: memref<64x1xf32, #tpu.memory_space<vmem>>, %arg8: memref<32x1xf32, #tpu.memory_space<vmem>>, %arg9: memref<32x1xf32, #tpu.memory_space<vmem>>, %arg10: memref<32x32xf32, #tpu.memory_space<vmem>>, %arg11: memref<32x256xf32, #tpu.memory_space<vmem>>, %arg12: memref<32x256xf32, #tpu.memory_space<vmem>>, %arg13: memref<64x256xf32, #tpu.memory_space<vmem>>, %arg14: memref<32x256xf32, #tpu.memory_space<vmem>>) attributes {dimension_semantics = [#tpu.dimension_semantics<parallel>], iteration_bounds = array<i64: 2>, scalar_prefetch = 0 : i64, scratch_operands = 3 : i64, tpu.core_type = #tpu.core_type<tc>, window_params = [{transform_indices = @transform_0, window_bounds = array<i64: 32, 256>}, {transform_indices = @transform_1, window_bounds = array<i64: 32, 256>}, {pipeline_mode = #tpu.pipeline_mode<synchronous>, transform_indices = @transform_2, window_bounds = array<i64: 32, 32>}, {pipeline_mode = #tpu.pipeline_mode<synchronous>, transform_indices = @transform_3, window_bounds = array<i64: 64, 32>}, {pipeline_mode = #tpu.pipeline_mode<synchronous>, transform_indices = @transform_4, window_bounds = array<i64: 32, 32>}, {pipeline_mode = #tpu.pipeline_mode<synchronous>, transform_indices = @transform_5, window_bounds = array<i64: 32, 1>}, {pipeline_mode = #tpu.pipeline_mode<synchronous>, transform_indices = @transform_6, window_bounds = array<i64: 64, 1>}, {pipeline_mode = #tpu.pipeline_mode<synchronous>, transform_indices = @transform_7, window_bounds = array<i64: 32, 1>}, {pipeline_mode = #tpu.pipeline_mode<synchronous>, transform_indices = @transform_8, window_bounds = array<i64: 32, 1>}, {pipeline_mode = #tpu.pipeline_mode<synchronous>, transform_indices = @transform_9, window_bounds = array<i64: 32, 32>}, {transform_indices = @transform_10, window_bounds = array<i64: 32, 256>}]} {
    %c0 = arith.constant 0 : index
    %c0_0 = arith.constant 0 : index
    %0 = vector.load %arg3[%c0, %c0_0] : memref<32x32xf32, #tpu.memory_space<vmem>>, vector<32x32xf32>
    %c0_1 = arith.constant 0 : index
    %c0_2 = arith.constant 0 : index
    %1 = vector.load %arg1[%c0_1, %c0_2] : memref<32x256xf32, #tpu.memory_space<vmem>>, vector<32x256xf32>
    %cst = arith.constant dense<0.000000e+00> : vector<32x256xf32>
    %2 = tpu.matmul %0, %1, %cst {dimension_numbers = #tpu.dot_dimension_numbers<[1], [0], [0], [1], [0, 0, 1, 1], [], []>} : vector<32x32xf32>, vector<32x256xf32>, vector<32x256xf32> -> vector<32x256xf32>
    %c0_3 = arith.constant 0 : index
    %c0_4 = arith.constant 0 : index
    %3 = vector.load %arg6[%c0_3, %c0_4] : memref<32x1xf32, #tpu.memory_space<vmem>>, vector<32x1xf32>
    %4 = vector.broadcast %3 : vector<32x1xf32> to vector<32x256xf32>
    %5 = arith.addf %2, %4 : vector<32x256xf32>
    %c0_5 = arith.constant 0 : index
    %c0_6 = arith.constant 0 : index
    %6 = vector.load %arg12[%c0_5, %c0_6] : memref<32x256xf32, #tpu.memory_space<vmem>>, vector<32x256xf32>
    tpu.vector_store %arg12[%c0_5, %c0_6], %5 {strides = array<i32>} : memref<32x256xf32, #tpu.memory_space<vmem>>, vector<32x256xf32>,
    %c0_7 = arith.constant 0 : index
    %c0_8 = arith.constant 0 : index
    %7 = vector.load %arg4[%c0_7, %c0_8] : memref<64x32xf32, #tpu.memory_space<vmem>>, vector<64x32xf32>
    %c0_9 = arith.constant 0 : index
    %c0_10 = arith.constant 0 : index
    %8 = vector.load %arg2[%c0_9, %c0_10] : memref<32x256xf32, #tpu.memory_space<vmem>>, vector<32x256xf32>
    %cst_11 = arith.constant dense<0.000000e+00> : vector<64x256xf32>
    %9 = tpu.matmul %7, %8, %cst_11 {dimension_numbers = #tpu.dot_dimension_numbers<[1], [0], [0], [1], [0, 0, 1, 1], [], []>} : vector<64x32xf32>, vector<32x256xf32>, vector<64x256xf32> -> vector<64x256xf32>
    %c0_12 = arith.constant 0 : index
    %c0_13 = arith.constant 0 : index
    %10 = vector.load %arg7[%c0_12, %c0_13] : memref<64x1xf32, #tpu.memory_space<vmem>>, vector<64x1xf32>
    %11 = vector.broadcast %10 : vector<64x1xf32> to vector<64x256xf32>
    %12 = arith.addf %9, %11 : vector<64x256xf32>
    %c0_14 = arith.constant 0 : index
    %c0_15 = arith.constant 0 : index
    %13 = vector.load %arg13[%c0_14, %c0_15] : memref<64x256xf32, #tpu.memory_space<vmem>>, vector<64x256xf32>
    tpu.vector_store %arg13[%c0_14, %c0_15], %12 {strides = array<i32>} : memref<64x256xf32, #tpu.memory_space<vmem>>, vector<64x256xf32>,
    %c0_16 = arith.constant 0 : index
    %c0_17 = arith.constant 0 : index
    %14 = vector.load %arg9[%c0_16, %c0_17] : memref<32x1xf32, #tpu.memory_space<vmem>>, vector<32x1xf32>
    %c0_18 = arith.constant 0 : index
    %c0_19 = arith.constant 0 : index
    %15 = vector.load %arg10[%c0_18, %c0_19] : memref<32x32xf32, #tpu.memory_space<vmem>>, vector<32x32xf32>
    %c0_20 = arith.constant 0 : index
    %c0_21 = arith.constant 0 : index
    %16 = vector.load %arg12[%c0_20, %c0_21] : memref<32x256xf32, #tpu.memory_space<vmem>>, vector<32x256xf32>
    %c0_22 = arith.constant 0 : index
    %c0_23 = arith.constant 0 : index
    %17 = vector.load %arg13[%c0_22, %c0_23] : memref<64x256xf32, #tpu.memory_space<vmem>>, vector<32x256xf32>
    %c32 = arith.constant 32 : index
    %c0_24 = arith.constant 0 : index
    %18 = vector.load %arg13[%c32, %c0_24] : memref<64x256xf32, #tpu.memory_space<vmem>>, vector<32x256xf32>
    %19 = arith.mulf %16, %16 : vector<32x256xf32>
    %cst_25 = arith.constant dense<0.000000e+00> : vector<32xf32>
    %20 = vector.multi_reduction <add>, %19, %cst_25 [1] : vector<32x256xf32> to vector<32xf32>
    %21 = vector.shape_cast %20 : vector<32xf32> to vector<32x1xf32>
    %cst_26 = arith.constant 1.000000e-24 : f32
    %22 = vector.broadcast %cst_26 : f32 to vector<32x1xf32>
    %23 = arith.maximumf %21, %22 : vector<32x1xf32>
    %24 = math.rsqrt %23 : vector<32x1xf32>
    %25 = vector.broadcast %24 : vector<32x1xf32> to vector<32x256xf32>
    %26 = arith.mulf %16, %25 : vector<32x256xf32>
    %27 = arith.mulf %17, %17 : vector<32x256xf32>
    %cst_27 = arith.constant dense<0.000000e+00> : vector<32xf32>
    %28 = vector.multi_reduction <add>, %27, %cst_27 [1] : vector<32x256xf32> to vector<32xf32>
    %29 = vector.shape_cast %28 : vector<32xf32> to vector<32x1xf32>
    %cst_28 = arith.constant 1.000000e-24 : f32
    %30 = vector.broadcast %cst_28 : f32 to vector<32x1xf32>
    %31 = arith.maximumf %29, %30 : vector<32x1xf32>
    %32 = math.rsqrt %31 : vector<32x1xf32>
    %33 = vector.broadcast %32 : vector<32x1xf32> to vector<32x256xf32>
    %34 = arith.mulf %17, %33 : vector<32x256xf32>
    %35 = vector.broadcast %14 : vector<32x1xf32> to vector<32x256xf32>
    %36 = arith.mulf %26, %35 : vector<32x256xf32>
    "tpu.trace_start"() <{level = 10 : i32, message = "cn,dn->cd"}> : () -> ()
    %cst_29 = arith.constant dense<0.000000e+00> : vector<32x32xf32>
    %37 = tpu.matmul %36, %34, %cst_29 {dimension_numbers = #tpu.dot_dimension_numbers<[1], [1], [0], [0], [0, 0, 1, 0], [], []>} : vector<32x256xf32>, vector<32x256xf32>, vector<32x32xf32> -> vector<32x32xf32>
    "tpu.trace_stop"() : () -> ()
    %38 = arith.addf %37, %15 : vector<32x32xf32>
    %cst_30 = arith.constant dense<0xFF800000> : vector<32xf32>
    %39 = vector.multi_reduction <maximumf>, %38, %cst_30 [1] : vector<32x32xf32> to vector<32xf32>
    %40 = vector.shape_cast %39 : vector<32xf32> to vector<32x1xf32>
    %41 = vector.broadcast %40 : vector<32x1xf32> to vector<32x32xf32>
    %42 = arith.subf %38, %41 : vector<32x32xf32>
    %43 = math.exp %42 : vector<32x32xf32>
    %cst_31 = arith.constant dense<0.000000e+00> : vector<32xf32>
    %44 = vector.multi_reduction <add>, %43, %cst_31 [1] : vector<32x32xf32> to vector<32xf32>
    %45 = vector.shape_cast %44 : vector<32xf32> to vector<32x1xf32>
    %46 = vector.broadcast %45 : vector<32x1xf32> to vector<32x32xf32>
    %47 = arith.divf %43, %46 : vector<32x32xf32>
    %cst_32 = arith.constant dense<0.000000e+00> : vector<32x256xf32>
    %48 = tpu.matmul %47, %18, %cst_32 {dimension_numbers = #tpu.dot_dimension_numbers<[1], [0], [0], [1], [0, 0, 1, 1], [], []>} : vector<32x32xf32>, vector<32x256xf32>, vector<32x256xf32> -> vector<32x256xf32>
    %c0_33 = arith.constant 0 : index
    %c0_34 = arith.constant 0 : index
    %49 = vector.load %arg14[%c0_33, %c0_34] : memref<32x256xf32, #tpu.memory_space<vmem>>, vector<32x256xf32>
    tpu.vector_store %arg14[%c0_33, %c0_34], %48 {strides = array<i32>} : memref<32x256xf32, #tpu.memory_space<vmem>>, vector<32x256xf32>,
    %c0_35 = arith.constant 0 : index
    %c0_36 = arith.constant 0 : index
    %50 = vector.load %arg5[%c0_35, %c0_36] : memref<32x32xf32, #tpu.memory_space<vmem>>, vector<32x32xf32>
    %c0_37 = arith.constant 0 : index
    %c0_38 = arith.constant 0 : index
    %51 = vector.load %arg14[%c0_37, %c0_38] : memref<32x256xf32, #tpu.memory_space<vmem>>, vector<32x256xf32>
    %cst_39 = arith.constant dense<0.000000e+00> : vector<32x256xf32>
    %52 = tpu.matmul %50, %51, %cst_39 {dimension_numbers = #tpu.dot_dimension_numbers<[1], [0], [0], [1], [0, 0, 1, 1], [], []>} : vector<32x32xf32>, vector<32x256xf32>, vector<32x256xf32> -> vector<32x256xf32>
    %c0_40 = arith.constant 0 : index
    %c0_41 = arith.constant 0 : index
    %53 = vector.load %arg8[%c0_40, %c0_41] : memref<32x1xf32, #tpu.memory_space<vmem>>, vector<32x1xf32>
    %54 = vector.broadcast %53 : vector<32x1xf32> to vector<32x256xf32>
    %55 = arith.addf %52, %54 : vector<32x256xf32>
    %c0_42 = arith.constant 0 : index
    %c0_43 = arith.constant 0 : index
    %56 = vector.load %arg11[%c0_42, %c0_43] : memref<32x256xf32, #tpu.memory_space<vmem>>, vector<32x256xf32>
    tpu.vector_store %arg11[%c0_42, %c0_43], %55 {strides = array<i32>} : memref<32x256xf32, #tpu.memory_space<vmem>>, vector<32x256xf32>,
    return
  }
  func.func @transform_0(%arg0: i32) -> (i32, i32) {
    %c0_i32 = arith.constant 0 : i32
    %c0_i32_0 = arith.constant 0 : i32
    return %c0_i32, %arg0 : i32, i32
  }
  func.func @transform_1(%arg0: i32) -> (i32, i32) {
    %c0_i32 = arith.constant 0 : i32
    %c0_i32_0 = arith.constant 0 : i32
    return %c0_i32, %arg0 : i32, i32
  }
  func.func @transform_2(%arg0: i32) -> (i32, i32) {
    %c0_i32 = arith.constant 0 : i32
    %c0_i32_0 = arith.constant 0 : i32
    %c0_i32_1 = arith.constant 0 : i32
    return %c0_i32, %c0_i32_0 : i32, i32
  }
  func.func @transform_3(%arg0: i32) -> (i32, i32) {
    %c0_i32 = arith.constant 0 : i32
    %c0_i32_0 = arith.constant 0 : i32
    %c0_i32_1 = arith.constant 0 : i32
    return %c0_i32, %c0_i32_0 : i32, i32
  }
  func.func @transform_4(%arg0: i32) -> (i32, i32) {
    %c0_i32 = arith.constant 0 : i32
    %c0_i32_0 = arith.constant 0 : i32
    %c0_i32_1 = arith.constant 0 : i32
    return %c0_i32, %c0_i32_0 : i32, i32
  }
  func.func @transform_5(%arg0: i32) -> (i32, i32) {
    %c0_i32 = arith.constant 0 : i32
    %c0_i32_0 = arith.constant 0 : i32
    %c0_i32_1 = arith.constant 0 : i32
    return %c0_i32, %c0_i32_0 : i32, i32
  }
  func.func @transform_6(%arg0: i32) -> (i32, i32) {
    %c0_i32 = arith.constant 0 : i32
    %c0_i32_0 = arith.constant 0 : i32
    %c0_i32_1 = arith.constant 0 : i32
    return %c0_i32, %c0_i32_0 : i32, i32
  }
  func.func @transform_7(%arg0: i32) -> (i32, i32) {
    %c0_i32 = arith.constant 0 : i32
    %c0_i32_0 = arith.constant 0 : i32
    %c0_i32_1 = arith.constant 0 : i32
    return %c0_i32, %c0_i32_0 : i32, i32
  }
  func.func @transform_8(%arg0: i32) -> (i32, i32) {
    %c0_i32 = arith.constant 0 : i32
    %c0_i32_0 = arith.constant 0 : i32
    %c0_i32_1 = arith.constant 0 : i32
    return %c0_i32, %c0_i32_0 : i32, i32
  }
  func.func @transform_9(%arg0: i32) -> (i32, i32) {
    %c0_i32 = arith.constant 0 : i32
    %c0_i32_0 = arith.constant 0 : i32
    %c0_i32_1 = arith.constant 0 : i32
    return %c0_i32, %c0_i32_0 : i32, i32
  }
  func.func @transform_10(%arg0: i32) -> (i32, i32) {
    %c0_i32 = arith.constant 0 : i32
    %c0_i32_0 = arith.constant 0 : i32
    return %c0_i32, %arg0 : i32, i32
  }
}

</mosaic_0001>

<bundles_post_ra>
// kernel: tpu_custom_call.1
= control target key start
LH: loop header
LB: loop body
LE: loop exit
PB: predicated region body
PF: predicated region fallthrough
CT: control target
= control target key end

     0   :  { %s2312_s0 = inlined_call_operand.vmem [shape: f32[32,512], index: 0, kind: input, shape index: {}]   ;;  %s2313_s1 = inlined_call_operand.vmem [shape: f32[32,512], index: 1, kind: input, shape index: {}]   ;;  %s2314_s2 = inlined_call_operand.hbm [shape: f32[32,32], index: 2, kind: input, shape index: {}]   ;;  %s2315_s3 = inlined_call_operand.vmem [shape: f32[64,32], index: 3, kind: input, shape index: {}]   ;;  %s2316_s4 = inlined_call_operand.hbm [shape: f32[32,32], index: 4, kind: input, shape index: {}]   ;;  %s2317_s5 = inlined_call_operand.vmem [shape: f32[32,1], index: 5, kind: input, shape index: {}]   ;;  %s2318_s6 = inlined_call_operand.vmem [shape: f32[64,1], index: 6, kind: input, shape index: {}]   ;;  %s2319_s7 = inlined_call_operand.vmem [shape: f32[32,1], index: 7, kind: input, shape index: {}]   ;;  %s2320_s8 = inlined_call_operand.vmem [shape: f32[32,1], index: 8, kind: input, shape index: {}]   ;;  %s2321_s9 = inlined_call_operand.vmem [shape: f32[32,32], index: 9, kind: input, shape index: {}]   ;;  %s2322_s10 = inlined_call_operand.hbm [shape: f32[32,512], index: 10, kind: output, shape index: {}]  }
   0x1   :  { %2331 = sst [smem:[#allocation20_spill]] %s2322_s10 }
   0x2   :  { %15 = vsyncpa [#allocation8], 0 }
   0x3   :  { %16 = vsyncpa [#allocation11], 0 }
   0x4   :  { %17 = vsyncpa [#allocation9], 0 }
   0x5   :  { %19 = vsyncpa [#allocation9 + $0x1], 0  ;;  %s1858_s13 = smov 0   ;;  %s1860_s14 = smov 0  }
   0x6   :  { %s1862_s15 = smov 0   ;;  %s1864_s16 = smov 0  }
   0x7 LB: > { %2332 = sst [smem:[#allocation16_spill]] %s1779_s13  ;;  %s1879_s17 = sadd.s32 4294967295, %s1791_s16   ;;  %s1791_s16 = sphi %s1864_s16, %s2353_s16   ;;  %s1787_s15 = sphi %s1862_s15, %s2357_s15   ;;  %s1783_s14 = sphi %s1860_s14, %s2356_s14   ;;  %s1779_s13 = sphi %s1858_s13, %s2355_s13  }
   0x8   : > { %s1479_s18 = sadd.s32 4294967294, %s1791_s16   ;;  %s1883_s19 = sadd.s32 1, %s1791_s16  }
   0x9   : > { %2333 = sst [smem:[#allocation17_spill]] %s1883_s19  ;;  %s32_s20 = sadd.s32 1, %s1787_s15 }
   0xa   : > { %s29_s21 = ssub.s32 %s1791_s16, %s1883_s19  ;;  %p39_p0 = scmp.ne.s32.totalorder %s1787_s15, %s1783_s14 }
   0xb   : > { %p30_p1 = scmp.eq.s32.totalorder %s29_s21, 0  ;;  %p40_p2 = scmp.eq.s32.totalorder %s1791_s16, 0 }
   0xc   : > { %p263_p3 = scmp.eq.s32.totalorder %s1879_s17, 1  ;;  %p268_p4 = scmp.ne.s32.totalorder %s1783_s14, %s1779_s13 }
   0xd   : > { %s1895_s22 = scalar_select %p30_p1, %s1787_s15, %s32_s20  }
   0xe   : > { %p1897_p5 = por %p40_p2, %p39_p0  ;;  %p1901_p6 = por %p263_p3, %p39_p0 }
   0xf   : > { %2334 = sst [smem:[#allocation18_spill]] %s1895_s22  ;;  %p269_p7 = scmp.eq.s32.totalorder %s1479_s18, 1 }
  0x10   : > { %s2335_s23 = scalar_select %p1897_p5, 1, 0 }
  0x11   : > { %s2336_s24 = scalar_select %p1901_p6, 1, 0 }
  0x12   : > { %p1480_p8 = scmp.ge.s32.totalorder %s1791_s16, 1  ;;  %p276_p9 = scmp.lt.s32.totalorder %s1791_s16, 3 }
  0x13   : > { %p1907_p10 = por %p269_p7, %p268_p4  ;;  %p2325_p11 = scmp.eq.s32.totalorder %s1879_s17, 0 }
  0x14   : > { %p1912_p12 = pnand %p1480_p8, %p276_p9  ;;  %s1793_s27 = smov [#allocation7]  }
  0x15   : > { %s2337_s25 = scalar_select %p1907_p10, 1, 0 }
  0x16   : > { %s2339_s26 = scalar_select %p1912_p12, 1, 0 }
  0x17   : > { %2338 = sst [smem:[#allocation19_spill]] %s2337_s25  ;;  %s288_s28 = sshll.u32 %s1793_s27, 4  ;;  %s289_s28 = int_to_ptr.vmem [resolvable:$true] %s288_s28 }
  0x18   : > { %p1574_p13 = pneg %p1912_p12  ;;  %s1794_s30 = smov [#allocation10]  }
  0x19   : > { %s304_s11 = sshll.u32 %s1794_s30, 4  ;;  %s1665_s20 = scalar_lea.hbm %s2314_s2, 512  ;;  %s1924_s11 = int_to_ptr.vmem [resolvable:$true] %s304_s11 }
  0x1a   : > { %p1920_p0 = pnand %p2325_p11, %p1574_p13  ;;  %p1666_p1 = scmp.ne.s32.totalorder %s2314_s2, %s1665_s20 }
  0x1b   : > { %p1672_p7 = scmp.lt.u32.totalorder %s1665_s20, %s2314_s2 }
  0x1c   : > { %p1667_p2 = pneg %p1920_p0 }
  0x1e   : > { %p1668_p3 = pnand %p1667_p2, %p1666_p1 }
  0x20   : > { %p1669_p4 = pneg %p1668_p3 }
  0x22   : > { %p1674_p8 = pnand %p1672_p7, %p1669_p4 }
  0x24   : > { %1677 = shalt.err (!%p1674_p8)
}
  0x25   : > { %s1678_s30 = scalar_lea.vmem %s289_s28, 512  ;;  %p1686_p10 = scmp.lt.s32.totalorder %s289_s28, %s289_s28 }
  0x26   : > { %p1679_p9 = scmp.ne.s32.totalorder %s289_s28, %s1678_s30  ;;  %p1687_p6 = scmp.lt.s32.totalorder %s1678_s30, %s1678_s30 }
  0x28   : > { %p1681_p13 = pnand %p1679_p9, %p1667_p2  ;;  %p1688_p12 = por %p1687_p6, %p1686_p10 }
  0x2a   : > { %p1682_p11 = pneg %p1681_p13 }
  0x2c   : > { %p1689_p5 = pnand %p1688_p12, %p1682_p11 }
  0x2e   : > { %1692 = shalt.err (!%p1689_p5)
}
  0x2f   : > { %s1795_s12 = smov 128   ;;  %s1796_s18 = smov 8  }
  0x30   : > { %1577 = dma.hbm_to_vmem [thread:$0]  (!%p1920_p0), %s2314_s2, 512, %s289_s28, [#allocation8], %s1795_s12, %s1795_s12, %s1796_s18  }
  0x31   : > { %s1693_s27 = scalar_lea.hbm %s2316_s4, 512 }
  0x32   : > { %p1694_p1 = scmp.ne.s32.totalorder %s2316_s4, %s1693_s27  ;;  %p1700_p10 = scmp.lt.u32.totalorder %s1693_s27, %s2316_s4 }
  0x34   : > { %p1696_p5 = pnand %p1694_p1, %p1667_p2 }
  0x36   : > { %p1697_p6 = pneg %p1696_p5 }
  0x38   : > { %p1702_p11 = pnand %p1700_p10, %p1697_p6 }
  0x3a   : > { %1705 = shalt.err (!%p1702_p11)
}
  0x3b   : > { %s1706_s28 = scalar_lea.vmem %s1924_s11, 512  ;;  %p1714_p7 = scmp.lt.s32.totalorder %s1924_s11, %s1924_s11 }
  0x3c   : > { %p1707_p12 = scmp.ne.s32.totalorder %s1924_s11, %s1706_s28  ;;  %p1715_p8 = scmp.lt.s32.totalorder %s1706_s28, %s1706_s28 }
  0x3e   : > { %p1709_p3 = pnand %p1707_p12, %p1667_p2  ;;  %p1716_p9 = por %p1715_p8, %p1714_p7 }
  0x40   : > { %p1710_p4 = pneg %p1709_p3 }
  0x42   : > { %p1717_p13 = pnand %p1716_p9, %p1710_p4 }
  0x44   : > { %1720 = shalt.err (!%p1717_p13)
}
  0x45   : > { %1580 = dma.hbm_to_vmem [thread:$0]  (!%p1920_p0), %s2316_s4, 512, %s1924_s11, [#allocation11], %s1795_s12, %s1795_s12, %s1796_s18  }
  0x46   : > { %p1483_p1 = scmp.ge.s32.totalorder %s1791_s16, 2 }
  0x47   : > { %p2341_p2 = scmp.ne.s32.totalorder (!%p1483_p1), %s2335_s23, 0 }
  0x48   : > { %329 = sbr.rel (%p1483_p1) target bundleno = 96 (0x60), region = 48 }
  0x4f   : > { %332 = sbr.rel (!%p2341_p2) target bundleno = 87 (0x57), region = 52  ;;  %s334_s25 = sand.u32 (%p2341_p2), 1, %s1787_s15  }
  0x50   : > { %s1521_s19 = sshll.u32 (%p2341_p2), %s1791_s16, 4  ;;  %s1484_s22 = sshll.u32 (%p2341_p2), %s334_s25, 6 }
  0x51   : > { %s339_s21 = scalar_lea.vmem (%p2341_p2), %s2312_s0, %s1521_s19  ;;  %s336_s11 = scalar_lea.vmem (%p2341_p2), [#allocation5], %s1484_s22 }
  0x52   : > { %v352_v0 = vld [vmem:[%s339_s21] sm:$0xff] (%p2341_p2)  ;;  %v354_v1 = vld [vmem:[%s339_s21 + $0x8] sm:$0xff] (%p2341_p2) }
  0x53   : > { %v356_v2 = vld [vmem:[%s339_s21 + $0x20] sm:$0xff] (%p2341_p2)  ;;  %353 = vst [vmem:[%s336_s11] sm:$0xff] (%p2341_p2), %v352_v0  ;;  %355 = vst [vmem:[%s336_s11 + $0x8] sm:$0xff] (%p2341_p2), %v354_v1  ;;  %v358_v3 = vld [vmem:[%s339_s21 + $0x28] sm:$0xff] (%p2341_p2) }
  0x54   : > { %357 = vst [vmem:[%s336_s11 + $0x10] sm:$0xff] (%p2341_p2), %v356_v2  ;;  %v360_v4 = vld [vmem:[%s339_s21 + $0x40] sm:$0xff] (%p2341_p2)  ;;  %v362_v5 = vld [vmem:[%s339_s21 + $0x48] sm:$0xff] (%p2341_p2)  ;;  %359 = vst [vmem:[%s336_s11 + $0x18] sm:$0xff] (%p2341_p2), %v358_v3 }
  0x55   : > { %361 = vst [vmem:[%s336_s11 + $0x20] sm:$0xff] (%p2341_p2), %v360_v4  ;;  %363 = vst [vmem:[%s336_s11 + $0x28] sm:$0xff] (%p2341_p2), %v362_v5  ;;  %v364_v6 = vld [vmem:[%s339_s21 + $0x60] sm:$0xff] (%p2341_p2)  ;;  %v366_v7 = vld [vmem:[%s339_s21 + $0x68] sm:$0xff] (%p2341_p2) }
  0x56   : > { %365 = vst [vmem:[%s336_s11 + $0x30] sm:$0xff] %v364_v6  ;;  %367 = vst [vmem:[%s336_s11 + $0x38] sm:$0xff] %v366_v7 }
  0x57 PF: > { %p2342_p0 = scmp.ne.s32.totalorder %s2335_s23, 0 }
  0x58   : > { %s375_s12 = sand.u32 (%p2342_p0), 1, %s1787_s15   ;;  %s1522_s18 = sshll.u32 (%p2342_p0), %s1791_s16, 4 }
  0x59   : > { %373 = sbr.rel (!%p2342_p0) target bundleno = 96 (0x60), region = 75  ;;  %s1487_s27 = sshll.u32 (%p2342_p0), %s375_s12, 6 }
  0x5a   : > { %s380_s10 = scalar_lea.vmem (%p2342_p0), %s2313_s1, %s1522_s18  ;;  %s377_s13 = scalar_lea.vmem (%p2342_p0), [#allocation6], %s1487_s27 }
  0x5b   : > { %v393_v8 = vld [vmem:[%s380_s10] sm:$0xff] (%p2342_p0)  ;;  %v395_v9 = vld [vmem:[%s380_s10 + $0x8] sm:$0xff] (%p2342_p0) }
  0x5c   : > { %v397_v10 = vld [vmem:[%s380_s10 + $0x20] sm:$0xff] (%p2342_p0)  ;;  %394 = vst [vmem:[%s377_s13] sm:$0xff] (%p2342_p0), %v393_v8  ;;  %396 = vst [vmem:[%s377_s13 + $0x8] sm:$0xff] (%p2342_p0), %v395_v9  ;;  %v399_v11 = vld [vmem:[%s380_s10 + $0x28] sm:$0xff] (%p2342_p0) }
  0x5d   : > { %398 = vst [vmem:[%s377_s13 + $0x10] sm:$0xff] (%p2342_p0), %v397_v10  ;;  %v401_v12 = vld [vmem:[%s380_s10 + $0x40] sm:$0xff] (%p2342_p0)  ;;  %v403_v13 = vld [vmem:[%s380_s10 + $0x48] sm:$0xff] (%p2342_p0)  ;;  %400 = vst [vmem:[%s377_s13 + $0x18] sm:$0xff] (%p2342_p0), %v399_v11 }
  0x5e   : > { %402 = vst [vmem:[%s377_s13 + $0x20] sm:$0xff] (%p2342_p0), %v401_v12  ;;  %404 = vst [vmem:[%s377_s13 + $0x28] sm:$0xff] (%p2342_p0), %v403_v13  ;;  %v405_v14 = vld [vmem:[%s380_s10 + $0x60] sm:$0xff] (%p2342_p0)  ;;  %v407_v15 = vld [vmem:[%s380_s10 + $0x68] sm:$0xff] (%p2342_p0) }
  0x5f   : > { %406 = vst [vmem:[%s377_s13 + $0x30] sm:$0xff] (%p2342_p0), %v405_v14  ;;  %408 = vst [vmem:[%s377_s13 + $0x38] sm:$0xff] (%p2342_p0), %v407_v15 }
  0x60 PF: > { %p2343_p5 = scmp.ne.s32.totalorder %s2339_s26, 0 }
  0x61   : > { %s420_s23 = sand.u32 (!%p2343_p5), 1, %s1783_s14   ;;  %p2344_p6 = scmp.eq.s32.totalorder (!%p2343_p5), %s1879_s17, 0 }
  0x62   : > { %417 = sbr.rel (%p2343_p5) target bundleno = 1571 (0x623), region = 98  ;;  %s1995_s25 = sshll.u32 (!%p2343_p5), %s420_s23, 6 }
  0x63   : > { %s1998_s19 = scalar_lea.vmem (!%p2343_p5), [#allocation5], %s1995_s25  ;;  %s2001_s22 = scalar_lea.vmem (!%p2343_p5), [#allocation6], %s1995_s25 }
  0x69   : > { %1766 = dma.done.wait (%p2344_p6), [#allocation8], 512   ;;  %p2345_p10 = pmov %p2344_p6 }
  0x6a   : > { %p2346_p11 = pmov %p2344_p6 }
  0x6b   : > { %1768 = vsyncadd (%p2345_p10), [#allocation8], 4294966784 }
  0x6c   : > { %1770 = dma.done.wait (%p2346_p11), [#allocation11], 512   ;;  %p2347_p12 = pmov %p2344_p6 }
  0x6d   : > { %v1797_v16 = vmov 0.0   ;;  %v1798_v17 = vmov 0   ;;  %v484_v18 = vld [vmem:[%s1998_s19 + $0x8] sm:$0xff]  ;;  %v486_v19 = vld [vmem:[%s1998_s19 + $0x18] sm:$0xff]  ;;  %v483_v23 = vld [vmem:[%s1998_s19] sm:$0xff]  ;;  %vm515_vm0 = vcmask 261120  }
  0x6e   : > { %1772 = vsyncadd (%p2347_p12), [#allocation11], 4294966784  ;;  %592 = vmatprep.mubr.f32.mxu0 %v1797_v16  ;;  %777 = vmatprep.mubr.f32.mxu1 %v1797_v16  ;;  %v634_v20 = vld [vmem:[%s2001_s22 + $0x8] sm:$0xff]  ;;  %v1524_v21 = vpack.c.bf16 %v486_v19, %v484_v18  ;;  %v636_v22 = vld [vmem:[%s2001_s22 + $0x18] sm:$0xff]  ;;  %s475_s30 = scalar_lea.vmem [#allocation12], %s1995_s25  ;;  %s1523_s10 = sshll.u32 %s1879_s17, 8 }
  0x6f   : > { %1631 = vset.pattern.permute.xlu0 %v1798_v17  ;;  %1632 = vset.pattern.permute.xlu1 %v1798_v17  ;;  %v485_v24 = vld [vmem:[%s1998_s19 + $0x10] sm:$0xff]  ;;  %v1532_v25 = vpack.c.bf16 %v636_v22, %v634_v20  ;;  %v633_v27 = vld [vmem:[%s2001_s22] sm:$0xff]  ;;  %v488_v29 = vld [vmem:[%s1998_s19 + $0x28] sm:$0xff]  ;;  %s1371_s28 = sshll.u32 %s475_s30, 4  ;;  %s2270_s17 = scalar_lea.sflag [#allocation9], %s420_s23  ;;  %s2261_s28 = int_to_ptr.vmem [resolvable:$true] %s1371_s28 }
  0x70   : > { %v1526_v26 = vpack.c.bf16 %v485_v24, %v483_v23  ;;  %v635_v28 = vld [vmem:[%s2001_s22 + $0x10] sm:$0xff]  ;;  %1525 = vmatprep.subr.bf16.mxu0 %v1524_v21  ;;  %v490_v31 = vld [vmem:[%s1998_s19 + $0x38] sm:$0xff]  ;;  %v638_v32 = vld [vmem:[%s2001_s22 + $0x28] sm:$0xff]  ;;  %s1721_s26 = scalar_lea.vmem %s2261_s28, 1024  ;;  %p2349_p4 = scmp.ne.s32.totalorder %s2336_s24, 0 }
  0x71   : > { %v1534_v30 = vpack.c.bf16 %v635_v28, %v633_v27  ;;  %v640_v33 = vld [vmem:[%s2001_s22 + $0x38] sm:$0xff]  ;;  %1533 = vmatprep.subr.bf16.mxu1 %v1532_v25  ;;  %v1528_v34 = vpack.c.bf16 %v490_v31, %v488_v29  ;;  %v487_v36 = vld [vmem:[%s1998_s19 + $0x20] sm:$0xff]  ;;  %v489_v37 = vld [vmem:[%s1998_s19 + $0x30] sm:$0xff]  ;;  %s2348_s19 = sld [smem:[#allocation20_spill]]  ;;  %p1722_p3 = scmp.ne.s32.totalorder %s2261_s28, %s1721_s26 }
  0x72   : > { %1527 = vmatpush1.bf16.msra.mxu0 %v1526_v26  ;;  %v1536_v35 = vpack.c.bf16 %v640_v33, %v638_v32  ;;  %v637_v38 = vld [vmem:[%s2001_s22 + $0x20] sm:$0xff]  ;;  %v1530_v39 = vpack.c.bf16 %v489_v37, %v487_v36  ;;  %v639_v40 = vld [vmem:[%s2001_s22 + $0x30] sm:$0xff]  ;;  %v642_v46 = vld [vmem:[%s2318_s6 + $0x8] sm:$0xff]  ;;  %s1799_s20 = smov [#allocation12]  }
  0x73   : > { %1535 = vmatpush1.bf16.msra.mxu1 %v1534_v30  ;;  %1529 = vmatprep.subr.bf16.mxu0 %v1528_v34  ;;  %v1538_v41 = vpack.c.bf16 %v639_v40, %v637_v38  ;;  %v479_v42 = vld [vmem:[#allocation7] sm:$0xff]  ;;  %v643_v44 = vld [vmem:[%s2318_s6 + $0x10] sm:$0xff]  ;;  %v644_v47 = vld [vmem:[%s2318_s6 + $0x18] sm:$0xff]  ;;  %p1723_p7 = pnand %p1722_p3, %p2349_p4  ;;  %s1725_s29 = sshll.u32 %s1799_s20, 4  ;;  %s1726_s29 = int_to_ptr.vmem [resolvable:$false] %s1725_s29 }
  0x74   : > { %1537 = vmatprep.subr.bf16.mxu1 %v1536_v35  ;;  %v641_v43 = vld [vmem:[%s2318_s6] sm:$0xff]  ;;  %661 = vperm.xlu1 %1632, %v643_v44   ;;  %v480_v48 = vld [vmem:[#allocation7 + $0x8] sm:$0xff]  ;;  %v481_v52 = vld [vmem:[#allocation7 + $0x10] sm:$0xff]  ;;  %s1727_s21 = scalar_lea.vmem %s1726_s29, 2048  ;;  %p1728_p9 = scmp.lt.s32.totalorder %s2261_s28, %s1726_s29 }
  0x75   : > { %v625_v45 = vld [vmem:[%s2315_s3] sm:$0xff]  ;;  %651 = vperm.xlu0 %1631, %v641_v43   ;;  %v626_v49 = vld [vmem:[%s2315_s3 + $0x8] sm:$0xff]  ;;  %v627_v53 = vld [vmem:[%s2315_s3 + $0x10] sm:$0xff]  ;;  %p1724_p8 = pneg %p1723_p7  ;;  %p1729_p13 = scmp.lt.s32.totalorder %s1727_s21, %s1721_s26 }
  0x76   : > { %1531 = vmatpush1.bf16.msra.mxu0 %v1530_v39  ;;  %v491_v50 = vld [vmem:[%s2317_s5] sm:$0xff]  ;;  %v492_v51 = vld [vmem:[%s2317_s5 + $0x8] sm:$0xff]  ;;  %v493_v54 = vld [vmem:[%s2317_s5 + $0x10] sm:$0xff] }
  0x77   : > { %1539 = vmatpush1.bf16.msra.mxu1 %v1538_v41  ;;  %v494_v55 = vld [vmem:[%s2317_s5 + $0x18] sm:$0xff]  ;;  %s2266_s22 = scalar_lea.hbm %s2348_s19, %s1523_s10  ;;  %p1730_p2 = por %p1729_p13, %p1728_p9 }
  0x78   : > { %666 = vperm.xlu1 %1632, %v644_v47   ;;  %v482_v56 = vld [vmem:[#allocation7 + $0x18] sm:$0xff] }
  0x79   : > { %1496 = vmatmul.mubr.msk.f32.vlgmr.msra.gmra.mrb[0].mxu0 %vm515_vm0, %v479_v42  ;;  %656 = vperm.xlu0 %1631, %v642_v46   ;;  %v628_v57 = vld [vmem:[%s2315_s3 + $0x18] sm:$0xff]  ;;  %p1731_p0 = pnand %p1730_p2, %p1724_p8 }
  0x7a   : > { %1500 = vmatmul.mubr.msk.f32.vlgmr.msra.gmra.mrb[0].mxu1 %vm515_vm0, %v625_v45  ;;  %598 = vmatprep.mubr.f32.mxu0 %v1797_v16 }
  0x7b   : > { %783 = vmatprep.mubr.f32.mxu1 %v1797_v16 }
  0x7c   : > { %502 = vperm.xlu1 %1632, %v492_v51  }
  0x7d   : > { %1497 = vmatmul.mubr.msk.f32.gmra.mrb[2].mxu0 %vm515_vm0, %v480_v48  ;;  %497 = vperm.xlu0 %1631, %v491_v50  }
  0x7e   : > { %1501 = vmatmul.mubr.msk.f32.gmra.mrb[2].mxu1 %vm515_vm0, %v626_v49  ;;  %604 = vmatprep.mubr.f32.mxu0 %v1797_v16 }
  0x7f   : > { %789 = vmatprep.mubr.f32.mxu1 %v1797_v16 }
  0x80   : > { %512 = vperm.xlu1 %1632, %v494_v55  }
  0x81   : > { %1498 = vmatmul.mubr.msk.f32.gmra.mrb[4].mxu0 %vm515_vm0, %v481_v52  ;;  %507 = vperm.xlu0 %1631, %v493_v54   ;;  %v843_v54 = vld [vmem:[%s2320_s8 + $0x8] sm:$0xff] }
  0x82   : > { %1502 = vmatmul.mubr.msk.f32.gmra.mrb[4].mxu1 %vm515_vm0, %v627_v53  ;;  %610 = vmatprep.mubr.f32.mxu0 %v1797_v16  ;;  %v842_v53 = vld [vmem:[%s2320_s8] sm:$0xff] }
  0x83   : > { %795 = vmatprep.mubr.f32.mxu1 %v1797_v16 }
  0x85   : > { %1499 = vmatmul.mubr.msk.f32.gmra.mrb[6].mxu0 %vm515_vm0, %v482_v56 }
  0x86   : > { %1503 = vmatmul.mubr.msk.f32.gmra.mrb[6].mxu1 %vm515_vm0, %v628_v57 }
  0x87   : > { %801 = vmatprep.mubr.f32.mxu1 %v1797_v16 }
  0xf3   : > { %v662_v59 = vpop.permute.xlu1 %661 }
  0xf4   : > { %v652_v58 = vpop.permute.xlu0 %651 }
  0xf7   : > { %v667_v61 = vpop.permute.xlu1 %666 }
  0xf8   : > { %v657_v60 = vpop.permute.xlu0 %656 }
  0xfb   : > { %v503_v8 = vpop.permute.xlu1 %502 }
  0xfc   : > { %v498_v62 = vpop.permute.xlu0 %497 }
  0xff   : > { %v513_v40 = vpop.permute.xlu1 %512 }
 0x100   : > { %v508_v55 = vpop.permute.xlu0 %507 }
 0x14c   : > { %v594_v63 = vpop.f32.mrb[0].mxu0 }
 0x14d   : > { %v2080_v0 = vadd.f32 %v594_v63, %v498_v62  ;;  %v779_v1 = vpop.f32.mrb[0].mxu1  ;;  %v596_v2 = vpop.f32.mrb[1].mxu0  ;;  %v629_v63 = vld [vmem:[%s2315_s3 + $0x20] sm:$0xff] }
 0x14e   : > { %v2082_v3 = vadd.f32 %v779_v1, %v652_v58  ;;  %v2084_v4 = vadd.f32 %v596_v2, %v498_v62  ;;  %v781_v5 = vpop.f32.mrb[1].mxu1  ;;  %v845_v62 = vld [vmem:[%s2320_s8 + $0x18] sm:$0xff]  ;;  %1504 = vmatmul.mubr.msk.f32.gmra.mrb[8].mxu1 %vm515_vm0, %v629_v63  ;;  %v630_v1 = vld [vmem:[%s2315_s3 + $0x28] sm:$0xff] }
 0x14f   : > { %v874_v6 = vmul.f32 %v2080_v0, %v2080_v0  ;;  %v2088_v7 = vadd.f32 %v781_v5, %v652_v58  ;;  %807 = vmatprep.mubr.f32.mxu1 %v1797_v16 }
 0x150   : > { %v910_v9 = vmul.f32 %v2082_v3, %v2082_v3  ;;  %v875_v10 = vmul.f32 %v2084_v4, %v2084_v4  ;;  %v600_v11 = vpop.f32.mrb[2].mxu0 }
 0x151   : > { %v911_v12 = vmul.f32 %v2088_v7, %v2088_v7  ;;  %v2096_v13 = vadd.f32 %v600_v11, %v503_v8  ;;  %v785_v14 = vpop.f32.mrb[2].mxu1  ;;  %v602_v15 = vpop.f32.mrb[3].mxu0 }
 0x152   : > { %v2098_v17 = vadd.f32 %v785_v14, %v657_v60  ;;  %v2100_v18 = vadd.f32 %v602_v15, %v503_v8  ;;  %v787_v19 = vpop.f32.mrb[3].mxu1  ;;  %v882_v20 = vadd.f32 %v875_v10, %v874_v6  ;;  %1505 = vmatmul.mubr.msk.f32.gmra.mrb[10].mxu1 %vm515_vm0, %v630_v1  ;;  %v847_v1 = vld [vmem:[%s2321_s9 + $0x8] sm:$0xff] }
 0x153   : > { %v876_v21 = vmul.f32 %v2096_v13, %v2096_v13  ;;  %v2104_v22 = vadd.f32 %v787_v19, %v657_v60  ;;  %v918_v23 = vadd.f32 %v911_v12, %v910_v9  ;;  %813 = vmatprep.mubr.f32.mxu1 %v1797_v16 }
 0x154   : > { %v912_v24 = vmul.f32 %v2098_v17, %v2098_v17  ;;  %v877_v25 = vmul.f32 %v2100_v18, %v2100_v18  ;;  %v606_v26 = vpop.f32.mrb[4].mxu0  ;;  %883 = vadd.xlane.f32.xlu1 %v882_v20 }
 0x155   : > { %v913_v27 = vmul.f32 %v2104_v22, %v2104_v22  ;;  %v791_v28 = vpop.f32.mrb[4].mxu1  ;;  %919 = vadd.xlane.f32.xlu0 %v918_v23  ;;  %v608_v29 = vpop.f32.mrb[5].mxu0  ;;  %v2142_v56 = vadd.f32 %v606_v26, %v508_v55 }
 0x156   : > { %v2112_v30 = vadd.f32 %v791_v28, %v662_v59  ;;  %v793_v31 = vpop.f32.mrb[5].mxu1  ;;  %v885_v32 = vadd.f32 %v877_v25, %v876_v21  ;;  %v2144_v57 = vadd.f32 %v608_v29, %v508_v55 }
 0x157   : > { %v2114_v33 = vadd.f32 %v793_v31, %v662_v59  ;;  %v921_v34 = vadd.f32 %v913_v27, %v912_v24  ;;  %v878_v58 = vmul.f32 %v2142_v56, %v2142_v56 }
 0x158   : > { %v914_v35 = vmul.f32 %v2112_v30, %v2112_v30  ;;  %v612_v36 = vpop.f32.mrb[6].mxu0  ;;  %v879_v59 = vmul.f32 %v2144_v57, %v2144_v57 }
 0x159   : > { %v915_v37 = vmul.f32 %v2114_v33, %v2114_v33  ;;  %v797_v38 = vpop.f32.mrb[6].mxu1  ;;  %886 = vadd.xlane.f32.xlu0 %v885_v32  ;;  %922 = vadd.xlane.f32.xlu1 %v921_v34  ;;  %v614_v39 = vpop.f32.mrb[7].mxu0  ;;  %v2122_v43 = vadd.f32 %v612_v36, %v513_v40 }
 0x15a   : > { %v2120_v41 = vadd.f32 %v797_v38, %v667_v61  ;;  %v799_v42 = vpop.f32.mrb[7].mxu1  ;;  %v2124_v44 = vadd.f32 %v614_v39, %v513_v40  ;;  %v888_v60 = vadd.f32 %v879_v59, %v878_v58 }
 0x15b   : > { %v2126_v45 = vadd.f32 %v799_v42, %v667_v61  ;;  %v924_v46 = vadd.f32 %v915_v37, %v914_v35  ;;  %v880_v49 = vmul.f32 %v2122_v43, %v2122_v43  ;;  %v844_v61 = vld [vmem:[%s2320_s8 + $0x10] sm:$0xff] }
 0x15c   : > { %v916_v47 = vmul.f32 %v2120_v41, %v2120_v41  ;;  %v881_v50 = vmul.f32 %v2124_v44, %v2124_v44 }
 0x15d   : > { %v917_v48 = vmul.f32 %v2126_v45, %v2126_v45  ;;  %925 = vadd.xlane.f32.xlu0 %v924_v46 }
 0x15e   : > { %v891_v52 = vadd.f32 %v881_v50, %v880_v49 }
 0x15f   : > { %v927_v51 = vadd.f32 %v917_v48, %v916_v47 }
 0x161   : > { %928 = vadd.xlane.f32.xlu0 %v927_v51 }
 0x165   : > { %892 = vadd.xlane.f32.xlu0 %v891_v52 }
 0x16a   : > { %948 = vperm.xlu1 %1632, %v842_v53  }
 0x17b   : > { %953 = vperm.xlu0 %1631, %v843_v54  }
 0x18e   : > { %889 = vadd.xlane.f32.xlu1 %v888_v60 }
 0x19f   : > { %958 = vperm.xlu1 %1632, %v844_v61  }
 0x1a3   : > { %963 = vperm.xlu1 %1632, %v845_v62  }
 0x1e1   : > { %v884_v2 = vpop.xlane.xlu1 %883 }
 0x1e2   : > { %v920_v5 = vpop.xlane.xlu0 %919  ;;  %v894_v6 = vmax.f32 %v884_v2, 1e-24 }
 0x1e3   : > { %v930_v8 = vmax.f32 %v920_v5, 1e-24 }
 0x1e4   : > { %1633 = vrsqrt.f32 %v894_v6 }
 0x1e5   : > { %1635 = vrsqrt.f32 %v930_v8 }
 0x1e6   : > { %v887_v9 = vpop.xlane.xlu0 %886  ;;  %v923_v10 = vpop.xlane.xlu1 %922 }
 0x1e7   : > { %v931_v11 = vmax.f32 %v923_v10, 1e-24  ;;  %v895_v27 = vmax.f32 %v887_v9, 1e-24  ;;  %v848_v10 = vld [vmem:[%s2321_s9 + $0x10] sm:$0xff] }
 0x1e9   : > { %1637 = vrsqrt.f32 %v931_v11 }
 0x1ea   : > { %v926_v12 = vpop.xlane.xlu0 %925  ;;  %v949_v23 = vpop.permute.xlu1 %948 }
 0x1eb   : > { %v932_v14 = vmax.f32 %v926_v12, 1e-24 }
 0x1ed   : > { %1639 = vrsqrt.f32 %v932_v14 }
 0x1ee   : > { %v1634_v15 = vpop.eup %1633  ;;  %v929_v19 = vpop.xlane.xlu0 %928 }
 0x1ef   : > { %v903_v20 = vmul.f32 %v1634_v15, %v2084_v4  ;;  %v933_v21 = vmax.f32 %v929_v19, 1e-24  ;;  %v1636_v25 = vpop.eup %1635  ;;  %v902_v42 = vmul.f32 %v1634_v15, %v2080_v0  ;;  %v849_v15 = vld [vmem:[%s2321_s9 + $0x18] sm:$0xff] }
 0x1f0   : > { %v939_v28 = vmul.f32 %v1636_v25, %v2088_v7  ;;  %v938_v31 = vmul.f32 %v1636_v25, %v2082_v3 }
 0x1f1   : > { %v967_v24 = vmul.f32 %v949_v23, %v903_v20  ;;  %1641 = vrsqrt.f32 %v933_v21  ;;  %v966_v48 = vmul.f32 %v949_v23, %v902_v42 }
 0x1f2   : > { %1643 = vrsqrt.f32 %v895_v27  ;;  %v893_v3 = vpop.xlane.xlu0 %892 }
 0x1f3   : > { %1038 = vmatprep.mubr.f32.mxu0 %v967_v24  ;;  %v1638_v26 = vpop.eup %1637 }
 0x1f4   : > { %v941_v29 = vmul.f32 %v1638_v26, %v2104_v22  ;;  %v940_v32 = vmul.f32 %v1638_v26, %v2098_v17  ;;  %v646_v26 = vld [vmem:[%s2318_s6 + $0x28] sm:$0xff] }
 0x1f6   : > { %v1540_v34 = vpack.c.bf16 %v941_v29, %v939_v28  ;;  %v1542_v35 = vpack.c.bf16 %v940_v32, %v938_v31 }
 0x1f7   : > { %v1640_v36 = vpop.eup %1639 }
 0x1f8   : > { %1541 = vmatprep.subr.bf16.mxu0 %v1540_v34  ;;  %v943_v37 = vmul.f32 %v1640_v36, %v2114_v33  ;;  %v942_v39 = vmul.f32 %v1640_v36, %v2112_v30 }
 0x1f9   : > { %1543 = vmatpush1.bf16.xpose.msra.mxu0 %v1542_v35 }
 0x1fa   : > { %v954_v46 = vpop.permute.xlu0 %953 }
 0x1fb   : > { %v1642_v4 = vpop.eup %1641 }
 0x1fc   : > { %v945_v38 = vmul.f32 %v1642_v4, %v2126_v45  ;;  %v944_v7 = vmul.f32 %v1642_v4, %v2120_v41  ;;  %v1644_v17 = vpop.eup %1643  ;;  %v897_v41 = vmax.f32 %v893_v3, 1e-24 }
 0x1fd   : > { %v905_v47 = vmul.f32 %v1644_v17, %v2100_v18  ;;  %v904_v33 = vmul.f32 %v1644_v17, %v2096_v13 }
 0x1fe   : > { %v1544_v22 = vpack.c.bf16 %v945_v38, %v943_v37  ;;  %v1546_v40 = vpack.c.bf16 %v944_v7, %v942_v39  ;;  %1645 = vrsqrt.f32 %v897_v41 }
 0x1ff   : > { %v969_v49 = vmul.f32 %v954_v46, %v905_v47  ;;  %v968_v30 = vmul.f32 %v954_v46, %v904_v33  ;;  %v648_v46 = vld [vmem:[%s2318_s6 + $0x38] sm:$0xff] }
 0x200   : > { %1545 = vmatprep.subr.bf16.mxu0 %v1544_v22  ;;  %v645_v22 = vld [vmem:[%s2318_s6 + $0x20] sm:$0xff] }
 0x201   : > { %1547 = vmatpush1.bf16.xpose.msra.mxu0 %v1546_v40  ;;  %v647_v40 = vld [vmem:[%s2318_s6 + $0x30] sm:$0xff] }
 0x208   : > { %1039 = vmatmul.mubr.f32.vlgmr.msra.gmra.mrb[8].mxu0 %v966_v48  ;;  %v1646_v52 = vpop.eup %1645 }
 0x209   : > { %1043 = vmatprep.mubr.f32.mxu0 %v969_v49  ;;  %v909_v13 = vmul.f32 %v1646_v52, %v2124_v44  ;;  %v908_v60 = vmul.f32 %v1646_v52, %v2122_v43  ;;  %v632_v44 = vld [vmem:[%s2315_s3 + $0x38] sm:$0xff]  ;;  %v846_v43 = vld [vmem:[%s2321_s9] sm:$0xff] }
 0x20c   : > { %1044 = vmatmul.mubr.f32.gmra.mrb[10].mxu0 %v968_v30 }
 0x21b   : > { %v890_v45 = vpop.xlane.xlu1 %889 }
 0x21c   : > { %v896_v50 = vmax.f32 %v890_v45, 1e-24 }
 0x21e   : > { %1647 = vrsqrt.f32 %v896_v50 }
 0x21f   : > { %v959_v51 = vpop.permute.xlu1 %958 }
 0x221   : > { %v803_v25 = vpop.f32.mrb[8].mxu1 }
 0x222   : > { %v805_v27 = vpop.f32.mrb[9].mxu1 }
 0x223   : > { %v964_v54 = vpop.permute.xlu1 %963 }
 0x224   : > { %v973_v59 = vmul.f32 %v964_v54, %v909_v13  ;;  %v972_v61 = vmul.f32 %v964_v54, %v908_v60  ;;  %v1227_v54 = vld [vmem:[%s2319_s7 + $0x18] sm:$0xff] }
 0x225   : > { %v809_v28 = vpop.f32.mrb[10].mxu1 }
 0x226   : > { %v811_v29 = vpop.f32.mrb[11].mxu1 }
 0x228   : > { %v1648_v53 = vpop.eup %1647 }
 0x229   : > { %v906_v0 = vmul.f32 %v1648_v53, %v2142_v56  ;;  %v907_v18 = vmul.f32 %v1648_v53, %v2144_v57  ;;  %v631_v56 = vld [vmem:[%s2315_s3 + $0x30] sm:$0xff] }
 0x22a   : > { %1506 = vmatmul.mubr.msk.f32.gmra.mrb[12].mxu1 %vm515_vm0, %v631_v56 }
 0x22b   : > { %v970_v55 = vmul.f32 %v959_v51, %v906_v0  ;;  %v971_v58 = vmul.f32 %v959_v51, %v907_v18  ;;  %819 = vmatprep.mubr.f32.mxu1 %v1797_v16  ;;  %v1224_v0 = vld [vmem:[%s2319_s7] sm:$0xff]  ;;  %v1226_v18 = vld [vmem:[%s2319_s7 + $0x10] sm:$0xff] }
 0x22d   : > { %1048 = vmatprep.mubr.f32.mxu0 %v971_v58 }
 0x22e   : > { %1049 = vmatmul.mubr.f32.gmra.mrb[12].mxu0 %v970_v55  ;;  %1507 = vmatmul.mubr.msk.f32.gmra.mrb[14].mxu1 %vm515_vm0, %v632_v44  ;;  %v1225_v55 = vld [vmem:[%s2319_s7 + $0x8] sm:$0xff] }
 0x22f   : > { %1053 = vmatprep.mubr.f32.mxu0 %v973_v59  ;;  %1324 = vmatprep.mubr.f32.mxu1 %v1797_v16 }
 0x232   : > { %1054 = vmatmul.mubr.f32.gmra.mrb[14].mxu0 %v972_v61 }
 0x233   : > { %1179 = vmatprep.mubr.f32.mxu0 %v1797_v16 }
 0x2db   : > { %v1040_v57 = vpop.f32.mrb[8].mxu0 }
 0x2dc   : > { %v1041_v62 = vadd.f32 %v1040_v57, %v846_v43  ;;  %v1042_v63 = vpop.f32.mrb[9].mxu0 }
 0x2de   : > { %v1059_v2 = vsel %vm515_vm0, %v1041_v62, -inf }
 0x2df   : > { %v1045_v5 = vpop.f32.mrb[10].mxu0  ;;  %1060 = vmax.xlane.f32.xlu0 %v1059_v2 }
 0x2e0   : > { %v1046_v6 = vadd.f32 %v1045_v5, %v847_v1  ;;  %v1047_v8 = vpop.f32.mrb[11].mxu0 }
 0x2e2   : > { %v1062_v9 = vsel %vm515_vm0, %v1046_v6, -inf }
 0x2e3   : > { %1063 = vmax.xlane.f32.xlu1 %v1062_v9 }
 0x2fd   : > { %v815_v3 = vpop.f32.mrb[12].mxu1 }
 0x2fe   : > { %v817_v17 = vpop.f32.mrb[13].mxu1 }
 0x301   : > { %v1050_v11 = vpop.f32.mrb[12].mxu0  ;;  %v821_v42 = vpop.f32.mrb[14].mxu1 }
 0x302   : > { %v1051_v12 = vadd.f32 %v1050_v11, %v848_v10  ;;  %v1052_v14 = vpop.f32.mrb[13].mxu0  ;;  %v823_v47 = vpop.f32.mrb[15].mxu1 }
 0x304   : > { %v1065_v19 = vsel %vm515_vm0, %v1051_v12, -inf }
 0x305   : > { %1066 = vmax.xlane.f32.xlu0 %v1065_v19  ;;  %v1055_v20 = vpop.f32.mrb[14].mxu0 }
 0x306   : > { %v1056_v21 = vadd.f32 %v1055_v20, %v849_v15  ;;  %v1057_v23 = vpop.f32.mrb[15].mxu0 }
 0x308   : > { %v1068_v24 = vsel %vm515_vm0, %v1056_v21, -inf }
 0x309   : > { %1069 = vmax.xlane.f32.xlu0 %v1068_v24 }
 0x31f   : > { %676 = vperm.xlu0 %1631, %v646_v26  }
 0x36c   : > { %v1061_v31 = vpop.xlane.xlu0 %1060 }
 0x36d   : > { %v1071_v32 = vsub.f32 %v1041_v62, %v1061_v31 }
 0x36f   : > { %v1075_v34 = vmul.f32 1.442695, %v1071_v32 }
 0x370   : > { %v1064_v35 = vpop.xlane.xlu1 %1063 }
 0x371   : > { %1649 = vpow2.f32 %v1075_v34  ;;  %v1072_v36 = vsub.f32 %v1046_v6, %v1064_v35 }
 0x373   : > { %v1077_v4 = vmul.f32 1.442695, %v1072_v36 }
 0x375   : > { %1651 = vpow2.f32 %v1077_v4 }
 0x37b   : > { %v2212_v37 = vpop.eup %1649 }
 0x37c   : > { %v1083_v38 = vsel %vm515_vm0, %v2212_v37, 0.0 }
 0x37d   : > { %1084 = vadd.xlane.f32.xlu1 %v1083_v38 }
 0x37f   : > { %v2216_v39 = vpop.eup %1651 }
 0x380   : > { %v1086_v7 = vsel %vm515_vm0, %v2216_v39, 0.0 }
 0x381   : > { %1087 = vadd.xlane.f32.xlu0 %v1086_v7  ;;  %v1213_v7 = vld [vmem:[#allocation10 + $0x8] sm:$0xff] }
 0x38e   : > { %671 = vperm.xlu1 %1632, %v645_v22   ;;  %v1214_v22 = vld [vmem:[#allocation10 + $0x10] sm:$0xff] }
 0x392   : > { %v1067_v48 = vpop.xlane.xlu0 %1066 }
 0x393   : > { %v1073_v49 = vsub.f32 %v1051_v12, %v1067_v48 }
 0x395   : > { %v1079_v33 = vmul.f32 1.442695, %v1073_v49 }
 0x396   : > { %v1070_v30 = vpop.xlane.xlu0 %1069 }
 0x397   : > { %681 = vperm.xlu0 %1631, %v647_v40   ;;  %1653 = vpow2.f32 %v1079_v33  ;;  %v1074_v41 = vsub.f32 %v1056_v21, %v1070_v30  ;;  %v1215_v40 = vld [vmem:[#allocation10 + $0x18] sm:$0xff] }
 0x399   : > { %v1081_v45 = vmul.f32 1.442695, %v1074_v41 }
 0x39b   : > { %686 = vperm.xlu0 %1631, %v648_v46   ;;  %1655 = vpow2.f32 %v1081_v45 }
 0x39e   : > { %v677_v13 = vpop.permute.xlu0 %676 }
 0x39f   : > { %v810_v60 = vadd.f32 %v809_v28, %v677_v13  ;;  %v812_v61 = vadd.f32 %v811_v29, %v677_v13 }
 0x3a1   : > { %v1654_v50 = vpop.eup %1653 }
 0x3a2   : > { %v1089_v51 = vsel %vm515_vm0, %v1654_v50, 0.0 }
 0x3a5   : > { %v1656_v52 = vpop.eup %1655 }
 0x3a6   : > { %v1092_v53 = vsel %vm515_vm0, %v1656_v52, 0.0 }
 0x3b2   : > { %1090 = vadd.xlane.f32.xlu1 %v1089_v51 }
 0x3ba   : > { %1093 = vadd.xlane.f32.xlu0 %v1092_v53 }
 0x3c3   : > { %1230 = vperm.xlu1 %1632, %v1224_v0  }
 0x3c7   : > { %1240 = vperm.xlu1 %1632, %v1226_v18  }
 0x3cb   : > { %1245 = vperm.xlu1 %1632, %v1227_v54  }
 0x3d0   : > { %1235 = vperm.xlu0 %1631, %v1225_v55  }
 0x40a   : > { %v1085_v58 = vpop.xlane.xlu1 %1084 }
 0x40b   : > { %1657 = vrcp.f32 %v1085_v58 }
 0x40e   : > { %v672_v59 = vpop.permute.xlu1 %671  ;;  %v1088_v62 = vpop.xlane.xlu0 %1087 }
 0x40f   : > { %v804_v56 = vadd.f32 %v803_v25, %v672_v59  ;;  %v806_v44 = vadd.f32 %v805_v27, %v672_v59  ;;  %1659 = vrcp.f32 %v1088_v62 }
 0x411   : > { %v1548_v43 = vpack.c.bf16 %v812_v61, %v806_v44  ;;  %v1550_v57 = vpack.c.bf16 %v810_v60, %v804_v56 }
 0x413   : > { %1549 = vmatprep.subr.bf16.mxu0 %v1548_v43 }
 0x414   : > { %1551 = vmatpush1.bf16.msra.mxu0 %v1550_v57 }
 0x415   : > { %v1658_v11 = vpop.eup %1657 }
 0x416   : > { %v682_v63 = vpop.permute.xlu0 %681  ;;  %v1096_v12 = vmul.f32 %v1658_v11, %v2212_v37 }
 0x417   : > { %v816_v2 = vadd.f32 %v815_v3, %v682_v63  ;;  %v818_v5 = vadd.f32 %v817_v17, %v682_v63 }
 0x419   : > { %v1660_v14 = vpop.eup %1659 }
 0x41a   : > { %v687_v1 = vpop.permute.xlu0 %686  ;;  %v1098_v15 = vmul.f32 %v1660_v14, %v2216_v39  ;;  %v1212_v39 = vld [vmem:[#allocation10] sm:$0xff] }
 0x41b   : > { %v822_v6 = vadd.f32 %v821_v42, %v687_v1  ;;  %v824_v8 = vadd.f32 %v823_v47, %v687_v1 }
 0x41d   : > { %v1552_v9 = vpack.c.bf16 %v824_v8, %v818_v5  ;;  %v1554_v10 = vpack.c.bf16 %v822_v6, %v816_v2 }
 0x41f   : > { %1553 = vmatprep.subr.bf16.mxu0 %v1552_v9 }
 0x420   : > { %1555 = vmatpush1.bf16.msra.mxu0 %v1554_v10 }
 0x423   : > { %1508 = vmatmul.mubr.msk.f32.vlgmr.msra.gmra.mrb[16].mxu0 %vm515_vm0, %v1096_v12 }
 0x424   : > { %1185 = vmatprep.mubr.f32.mxu0 %v1797_v16 }
 0x427   : > { %1509 = vmatmul.mubr.msk.f32.gmra.mrb[18].mxu0 %vm515_vm0, %v1098_v15 }
 0x428   : > { %1191 = vmatprep.mubr.f32.mxu0 %v1797_v16 }
 0x43f   : > { %v1091_v19 = vpop.xlane.xlu1 %1090 }
 0x440   : > { %1661 = vrcp.f32 %v1091_v19 }
 0x443   : > { %v1231_v3 = vpop.permute.xlu1 %1230 }
 0x447   : > { %v1094_v20 = vpop.xlane.xlu0 %1093  ;;  %v1241_v41 = vpop.permute.xlu1 %1240 }
 0x448   : > { %1663 = vrcp.f32 %v1094_v20 }
 0x44a   : > { %v1662_v21 = vpop.eup %1661 }
 0x44b   : > { %v1100_v23 = vmul.f32 %v1662_v21, %v1654_v50  ;;  %v1246_v53 = vpop.permute.xlu1 %1245 }
 0x44d   : > { %1510 = vmatmul.mubr.msk.f32.gmra.mrb[20].mxu0 %vm515_vm0, %v1100_v23 }
 0x44e   : > { %1197 = vmatprep.mubr.f32.mxu0 %v1797_v16 }
 0x44f   : > { %v1236_v48 = vpop.permute.xlu0 %1235 }
 0x452   : > { %v1664_v24 = vpop.eup %1663 }
 0x453   : > { %v1102_v25 = vmul.f32 %v1664_v24, %v1656_v52 }
 0x455   : > { %1511 = vmatmul.mubr.msk.f32.gmra.mrb[22].mxu0 %vm515_vm0, %v1102_v25 }
 0x4f6   : > { %v1181_v26 = vpop.f32.mrb[16].mxu0 }
 0x4f7   : > { %v1183_v27 = vpop.f32.mrb[17].mxu0 }
 0x4fa   : > { %v1187_v28 = vpop.f32.mrb[18].mxu0 }
 0x4fb   : > { %v1558_v29 = vpack.c.bf16 %v1187_v28, %v1181_v26  ;;  %v1189_v31 = vpop.f32.mrb[19].mxu0 }
 0x4fc   : > { %v1556_v32 = vpack.c.bf16 %v1189_v31, %v1183_v27 }
 0x4fe   : > { %1557 = vmatprep.subr.bf16.mxu1 %v1556_v32 }
 0x4ff   : > { %1559 = vmatpush1.bf16.msra.mxu1 %v1558_v29 }
 0x520   : > { %v1193_v34 = vpop.f32.mrb[20].mxu0 }
 0x521   : > { %v1195_v35 = vpop.f32.mrb[21].mxu0 }
 0x528   : > { %v1199_v36 = vpop.f32.mrb[22].mxu0 }
 0x529   : > { %v1562_v4 = vpack.c.bf16 %v1199_v36, %v1193_v34  ;;  %v1201_v37 = vpop.f32.mrb[23].mxu0 }
 0x52a   : > { %v1560_v38 = vpack.c.bf16 %v1201_v37, %v1195_v35 }
 0x52c   : > { %1561 = vmatprep.subr.bf16.mxu1 %v1560_v38 }
 0x52d   : > { %1563 = vmatpush1.bf16.msra.mxu1 %v1562_v4 }
 0x530   : > { %1512 = vmatmul.mubr.msk.f32.vlgmr.msra.gmra.mrb[16].mxu1 %vm515_vm0, %v1212_v39 }
 0x531   : > { %1330 = vmatprep.mubr.f32.mxu1 %v1797_v16 }
 0x534   : > { %1513 = vmatmul.mubr.msk.f32.gmra.mrb[18].mxu1 %vm515_vm0, %v1213_v7 }
 0x535   : > { %1336 = vmatprep.mubr.f32.mxu1 %v1797_v16 }
 0x538   : > { %1514 = vmatmul.mubr.msk.f32.gmra.mrb[20].mxu1 %vm515_vm0, %v1214_v22 }
 0x539   : > { %1342 = vmatprep.mubr.f32.mxu1 %v1797_v16 }
 0x53c   : > { %1515 = vmatmul.mubr.msk.f32.gmra.mrb[22].mxu1 %vm515_vm0, %v1215_v40 }
 0x603   : > { %v1326_v17 = vpop.f32.mrb[16].mxu1 }
 0x604   : > { %v1327_v42 = vadd.f32 %v1326_v17, %v1231_v3  ;;  %v1328_v46 = vpop.f32.mrb[17].mxu1 }
 0x605   : > { %v1329_v47 = vadd.f32 %v1328_v46, %v1231_v3 }
 0x606   : > { %1349 = vst [vmem:[%s475_s30] sm:$0xff] %v1327_v42 }
 0x607   : > { %1350 = vst [vmem:[%s475_s30 + $0x8] sm:$0xff] %v1329_v47  ;;  %v1332_v49 = vpop.f32.mrb[18].mxu1 }
 0x608   : > { %v1333_v33 = vadd.f32 %v1332_v49, %v1236_v48  ;;  %v1334_v30 = vpop.f32.mrb[19].mxu1 }
 0x609   : > { %v1335_v45 = vadd.f32 %v1334_v30, %v1236_v48 }
 0x60a   : > { %1351 = vst [vmem:[%s475_s30 + $0x10] sm:$0xff] %v1333_v33 }
 0x60b   : > { %1352 = vst [vmem:[%s475_s30 + $0x18] sm:$0xff] %v1335_v45  ;;  %v1338_v16 = vpop.f32.mrb[20].mxu1 }
 0x60c   : > { %v1339_v50 = vadd.f32 %v1338_v16, %v1241_v41  ;;  %v1340_v51 = vpop.f32.mrb[21].mxu1 }
 0x60d   : > { %v1341_v52 = vadd.f32 %v1340_v51, %v1241_v41 }
 0x60e   : > { %1353 = vst [vmem:[%s475_s30 + $0x20] sm:$0xff] %v1339_v50 }
 0x60f   : > { %1354 = vst [vmem:[%s475_s30 + $0x28] sm:$0xff] %v1341_v52  ;;  %v1344_v0 = vpop.f32.mrb[22].mxu1 }
 0x610   : > { %v1345_v18 = vadd.f32 %v1344_v0, %v1246_v53  ;;  %v1346_v54 = vpop.f32.mrb[23].mxu1 }
 0x611   : > { %v1347_v55 = vadd.f32 %v1346_v54, %v1246_v53 }
 0x612   : > { %1355 = vst [vmem:[%s475_s30 + $0x30] sm:$0xff] %v1345_v18 }
 0x613   : > { %1356 = vst [vmem:[%s475_s30 + $0x38] sm:$0xff] %v1347_v55 }
 0x614   : > { %1734 = shalt.err (!%p1731_p0)
}
 0x615   : > { %s1735_s23 = scalar_lea.hbm %s2266_s22, 1024  ;;  %s1739_s18 = scalar_lea.hbm %s2348_s19, 2048 }
 0x616   : > { %p1736_p5 = scmp.ne.s32.totalorder %s2266_s22, %s1735_s23  ;;  %p1740_p11 = scmp.lt.u32.totalorder %s2266_s22, %s2348_s19 }
 0x617   : > { %p1741_p12 = scmp.lt.u32.totalorder %s1739_s18, %s1735_s23  ;;  %p1743_p7 = scmp.lt.u32.totalorder %s1735_s23, %s2266_s22 }
 0x618   : > { %p1737_p6 = pnand %p1736_p5, %p2349_p4 }
 0x619   : > { %p1742_p3 = por %p1741_p12, %p1740_p11 }
 0x61a   : > { %p1738_p10 = pneg %p1737_p6 }
 0x61b   : > { %p1744_p8 = por %p1743_p7, %p1742_p3 }
 0x61d   : > { %p1745_p9 = pnand %p1744_p8, %p1738_p10 }
 0x61f   : > { %1748 = shalt.err (!%p1745_p9)
}
 0x620   : > { %s1800_s10 = smov 256   ;;  %s1801_s25 = smov 512  }
 0x621   : > { %s1802_s13 = smov 16  }
 0x622   : > { %1572 = dma.vmem_to_hbm [thread:$0]  (%p2349_p4), %s2261_s28, 1024, %s2266_s22, %s2270_s17, %s1800_s10, %s1801_s25, %s1802_s13  }
 0x623 PF: > { %s2350_s26 = sld [smem:[#allocation16_spill]]  ;;  %s2351_s20 = sld [smem:[#allocation19_spill]] }
 0x629   : > { %s1386_s29 = sand.u32 1, %s2350_s26   ;;  %p2352_p13 = scmp.ne.s32.totalorder %s2351_s20, 0 }
 0x62a   : > { %s1387_s21 = scalar_lea.sflag [#allocation9], %s1386_s29 }
 0x62b   : > { %p1582_p2 = pnand %p1483_p1, %p2352_p13 }
 0x62d   : > { %1774 = dma.done.wait (!%p1582_p2), %s1387_s21, 1024  }
 0x62e   : > { %1776 = vsyncadd (!%p1582_p2), %s1387_s21, 4294966272  ;;  %s2353_s16 = sld [smem:[#allocation17_spill]]  ;;  %s2354_s23 = sld [smem:[#allocation18_spill]] }
 0x62f   : > { %s2355_s13 = smov %s1783_s14  ;;  %s2356_s14 = smov %s1787_s15 }
 0x634   : > { %p22_p0 = scmp.ge.s32.totalorder %s2353_s16, 4   ;;  %s2357_s15 = smov %s2354_s23 }
 0x636   :  { %24 = sbr.rel (!%p22_p0) target bundleno = 7 (0x7), region = 163 }
 0x63d   :  { %1392 = vsyncpa [#allocation8], 1 }
 0x63e   :  { %1394 = vsyncpa [#allocation8 + $0x1], 1 }
 0x63f   :  { %1395 = vsyncpa [#allocation11], 1 }
 0x640   :  { %1396 = vsyncpa [#allocation9], 1 }
 0x641   :  { %1398 = vsyncpa [#allocation9 + $0x1], 1 }

</bundles_post_ra>
